<compile_context>
chip_gen: v7x
topology: tpu7x:2x2x1
jax: 0.10.0
libtpu: 0.0.40
codegen_flags: <defaults>
</compile_context>

<pallas_src>
import functools

import jax
import jax.numpy as jnp
from jax.experimental import pallas as pl
from jax.experimental.pallas import tpu as pltpu

HIDDEN = 128        # lane-padded output slab width (col 0 = binary, 1..5 = classes)
N_CLASSES = 5


def _stepwise_kernel(x_ref, w_ref, b_ref, out_ref):
    neg_inf = jnp.float32(-1e30)

    # Single fused matmul: (Bt, F) x (F, 128), native bf16, f32 accumulation.
    x = x_ref[...].astype(jnp.bfloat16)
    slab = jnp.dot(x, w_ref[...], preferred_element_type=jnp.float32) + b_ref[...]

    col = jax.lax.broadcasted_iota(jnp.int32, slab.shape, 1)
    is_bin = col == 0
    is_cls = (col >= 1) & (col < 1 + N_CLASSES)

    # Stable-softmax max over the class lanes only.
    m = jnp.max(jnp.where(is_cls, slab, neg_inf), axis=-1, keepdims=True)

    # One exp pass services both heads:
    #   col 0     -> exp(-z0)     (sigmoid denominator term)
    #   cols 1..5 -> exp(z - m)   (softmax numerators)
    #   cols 6..  -> exp(-inf)=0  (lane padding)
    pre = jnp.where(is_bin, -slab, jnp.where(is_cls, slab - m, neg_inf))
    e = jnp.exp(pre)

    cls_sum = jnp.sum(jnp.where(is_cls, e, 0.0), axis=-1, keepdims=True)
    denom = jnp.where(is_bin, 1.0 + e, cls_sum)
    numer = jnp.where(is_bin, 1.0, e)
    out_ref[...] = (numer * pl.reciprocal(denom, approx=True)).astype(out_ref.dtype)


def prepare_params(params):
    """One-time prep: fold ALL Linear layers (1, out_binary, 2, 3, 4) into a
    single (F, 128) bf16 weight + (1, 128) f32 bias. Exact: the reference has
    no nonlinearity between the Linear layers."""
    w1 = jnp.asarray(params["linear_1_w"], jnp.float32)            # (128, F)
    b1 = jnp.asarray(params["linear_1_b"], jnp.float32)            # (128,)
    wb = jnp.asarray(params["linear_out_binary_w"], jnp.float32)   # (1, 128)
    bb = jnp.asarray(params["linear_out_binary_b"], jnp.float32)   # (1,)
    w2 = jnp.asarray(params["linear_2_w"], jnp.float32)            # (128, 128)
    b2 = jnp.asarray(params["linear_2_b"], jnp.float32)
    w3 = jnp.asarray(params["linear_3_w"], jnp.float32)
    b3 = jnp.asarray(params["linear_3_b"], jnp.float32)
    w4 = jnp.asarray(params["linear_4_w"], jnp.float32)            # (5, 128)
    b4 = jnp.asarray(params["linear_4_b"], jnp.float32)            # (5,)

    in_features = w1.shape[1]

    # Class chain over the 128-d hidden.
    w234 = w2.T @ w3.T @ w4.T                                      # (128, 5)
    b234 = b2 @ w3.T @ w4.T + b3 @ w4.T + b4                       # (5,)

    # Fold linear_1 so the kernel does a single matmul from the raw features.
    w_bin = w1.T @ wb.T                                            # (F, 1)
    b_bin = b1 @ wb.T + bb                                         # (1,)
    w_cls = w1.T @ w234                                            # (F, 5)
    b_cls = b1 @ w234 + b234                                       # (5,)

    w_all = jnp.zeros((in_features, HIDDEN), jnp.float32)
    w_all = w_all.at[:, 0:1].set(w_bin)
    w_all = w_all.at[:, 1:1 + N_CLASSES].set(w_cls)
    b_all = jnp.zeros((1, HIDDEN), jnp.float32)
    b_all = b_all.at[0, 0].set(b_bin[0])
    b_all = b_all.at[0, 1:1 + N_CLASSES].set(b_cls)

    return w_all.astype(jnp.bfloat16), b_all                       # weights bf16, bias f32


def _round_up(v, m):
    return -(-v // m) * m


def _pick_batch_tile(batch, block_b):
    block_b = max(8, _round_up(block_b, 8))
    if batch > block_b:
        return block_b
    if batch <= 16:
        return batch                 # single full-extent block; latency-bound anyway
    # Aim for >= 2 grid steps so v7x's two TensorCores both get work.
    return min(block_b, _round_up(-(-batch // 2), 8))


@functools.partial(jax.jit, static_argnames=("block_b",))
def stepwise_classifier(x, prepared, *, block_b=1024):
    """x: (B, in_features) f32. Returns (sigmoid prob (B,1), softmax probs (B,5)) f32."""
    B, F = x.shape
    w_all, b_all = prepared
    bt = _pick_batch_tile(B, block_b)
    # No jnp.pad: if bt does not divide B, the OOB rows of the last block are
    # garbage on read (rows are independent) and dropped on write.
    grid = (pl.cdiv(B, bt),)

    slab = pl.pallas_call(
        _stepwise_kernel,
        out_shape=jax.ShapeDtypeStruct((B, HIDDEN), jnp.bfloat16),
        grid=grid,
        in_specs=[
            pl.BlockSpec((bt, F), lambda i: (i, 0)),         # x: tiled over batch
            pl.BlockSpec((F, HIDDEN), lambda i: (0, 0)),     # fused weight: resident
            pl.BlockSpec((1, HIDDEN), lambda i: (0, 0)),     # fused bias: resident
        ],
        out_specs=pl.BlockSpec((bt, HIDDEN), lambda i: (i, 0)),
        compiler_params=pltpu.CompilerParams(
            dimension_semantics=("parallel",),               # shard batch over v7x's 2 TCs
            vmem_limit_bytes=48 * 1024 * 1024),              # safe ceiling on v5e/v6e/v7x
    )(x, w_all, b_all)

    out_bin = slab[:, 0:1].astype(jnp.float32)
    out_cls = slab[:, 1:1 + N_CLASSES].astype(jnp.float32)
    return out_bin, out_cls


def init_params(key, in_features):
    """Deterministic init mimicking PyTorch Linear default (uniform +-1/sqrt(fan_in))."""
    shapes = {
        "linear_1": (HIDDEN, in_features),
        "linear_out_binary": (1, HIDDEN),
        "linear_2": (HIDDEN, HIDDEN),
        "linear_3": (HIDDEN, HIDDEN),
        "linear_4": (N_CLASSES, HIDDEN),
    }
    params = {}
    for name, (out_f, in_f) in shapes.items():
        key, kw, kb = jax.random.split(key, 3)
        bound = 1.0 / jnp.sqrt(jnp.float32(in_f))
        params[name + "_w"] = jax.random.uniform(
            kw, (out_f, in_f), jnp.float32, -bound, bound)
        params[name + "_b"] = jax.random.uniform(
            kb, (out_f,), jnp.float32, -bound, bound)
    return params


def reference(x, params):
    """Pure-JAX reference of the PyTorch forward."""
    def lin(v, name):
        return v @ jnp.asarray(params[name + "_w"]).T + params[name + "_b"]
    h1 = lin(x, "linear_1")
    xb = jax.nn.sigmoid(lin(h1, "linear_out_binary"))
    h = lin(lin(lin(h1, "linear_2"), "linear_3"), "linear_4")
    return xb, jax.nn.softmax(h, axis=-1)


if __name__ == "__main__":
    key = jax.random.PRNGKey(0)
    B, in_features = 8, 512  # resnet18 FC in_features = 512
    kx, kp = jax.random.split(key)
    x = jax.random.normal(kx, (B, in_features), jnp.float32)
    params = init_params(kp, in_features)
    prepared = prepare_params(params)  # one-time: fold all Linears, cast weight to bf16

    out_bin, out_cls = stepwise_classifier(x, prepared)
    jax.block_until_ready((out_bin, out_cls))

    ref_bin, ref_cls = reference(x, params)
    assert out_bin.shape == (B, 1) and out_cls.shape == (B, N_CLASSES)
    # bf16 weights/activations/output + approx reciprocal => looser tolerance than pure f32.
    assert jnp.allclose(out_bin, ref_bin, atol=2e-2, rtol=2e-2)
    assert jnp.allclose(out_cls, ref_cls, atol=2e-2, rtol=2e-2)
    assert jnp.allclose(jnp.sum(out_cls, axis=-1), 1.0, atol=1e-2)

    # Larger batch: >=2 grid steps (v7x sharding) with a non-dividing tail block
    # (exercises the no-pad path where OOB rows of the last block are dropped).
    B2 = 200
    x2 = jax.random.normal(jax.random.PRNGKey(1), (B2, in_features), jnp.float32)
    ob, oc = stepwise_classifier(x2, prepared, block_b=128)
    jax.block_until_ready((ob, oc))
    rb, rc = reference(x2, params)
    assert ob.shape == (B2, 1) and oc.shape == (B2, N_CLASSES)
    assert jnp.allclose(ob, rb, atol=2e-2, rtol=2e-2)
    assert jnp.allclose(oc, rc, atol=2e-2, rtol=2e-2)

    print("KERNEL_OK")
</pallas_src>

<mosaic_0001>
module attributes {stable_mosaic.version = 11 : i64} {
  func.func @_stepwise_kernel(%arg0: i32, %arg1: memref<8x512xf32, #tpu.memory_space<vmem>>, %arg2: memref<512x128xbf16, #tpu.memory_space<vmem>>, %arg3: memref<1x128xf32, #tpu.memory_space<vmem>>, %arg4: memref<8x128xbf16, #tpu.memory_space<vmem>>) attributes {dimension_semantics = [#tpu.dimension_semantics<parallel>], iteration_bounds = array<i64: 1>, scalar_prefetch = 0 : i64, scratch_operands = 0 : i64, tpu.core_type = #tpu.core_type<tc>, window_params = [{transform_indices = @transform_0, window_bounds = array<i64: 8, 512>}, {pipeline_mode = #tpu.pipeline_mode<synchronous>, transform_indices = @transform_1, window_bounds = array<i64: 512, 128>}, {pipeline_mode = #tpu.pipeline_mode<synchronous>, transform_indices = @transform_2, window_bounds = array<i64: 1, 128>}, {transform_indices = @transform_3, window_bounds = array<i64: 8, 128>}]} {
    %c0 = arith.constant 0 : index
    %c0_0 = arith.constant 0 : index
    %0 = vector.load %arg1[%c0, %c0_0] : memref<8x512xf32, #tpu.memory_space<vmem>>, vector<8x512xf32>
    %1 = arith.truncf %0 : vector<8x512xf32> to vector<8x512xbf16>
    %c0_1 = arith.constant 0 : index
    %c0_2 = arith.constant 0 : index
    %2 = vector.load %arg2[%c0_1, %c0_2] : memref<512x128xbf16, #tpu.memory_space<vmem>>, vector<512x128xbf16>
    %cst = arith.constant dense<0.000000e+00> : vector<8x128xf32>
    %3 = tpu.matmul %1, %2, %cst {dimension_numbers = #tpu.dot_dimension_numbers<[1], [0], [0], [1], [0, 0, 1, 1], [], []>} : vector<8x512xbf16>, vector<512x128xbf16>, vector<8x128xf32> -> vector<8x128xf32>
    %c0_3 = arith.constant 0 : index
    %c0_4 = arith.constant 0 : index
    %4 = vector.load %arg3[%c0_3, %c0_4] : memref<1x128xf32, #tpu.memory_space<vmem>>, vector<1x128xf32>
    %5 = vector.broadcast %4 : vector<1x128xf32> to vector<8x128xf32>
    %6 = arith.addf %3, %5 : vector<8x128xf32>
    %7 = tpu.iota {dimensions = array<i32: 1>} : vector<8x128xi32>
    %c0_i32 = arith.constant 0 : i32
    %8 = vector.broadcast %c0_i32 : i32 to vector<8x128xi32>
    %9 = arith.cmpi eq, %7, %8 : vector<8x128xi32>
    %c1_i32 = arith.constant 1 : i32
    %10 = vector.broadcast %c1_i32 : i32 to vector<8x128xi32>
    %11 = arith.cmpi sge, %7, %10 : vector<8x128xi32>
    %c6_i32 = arith.constant 6 : i32
    %12 = vector.broadcast %c6_i32 : i32 to vector<8x128xi32>
    %13 = arith.cmpi slt, %7, %12 : vector<8x128xi32>
    %14 = arith.andi %11, %13 : vector<8x128xi1>
    %cst_5 = arith.constant -1.000000e+30 : f32
    %15 = vector.broadcast %cst_5 : f32 to vector<8x128xf32>
    %16 = arith.select %14, %6, %15 : vector<8x128xi1>, vector<8x128xf32>
    %cst_6 = arith.constant dense<0xFF800000> : vector<8xf32>
    %17 = vector.multi_reduction <maximumf>, %16, %cst_6 [1] : vector<8x128xf32> to vector<8xf32>
    %18 = vector.shape_cast %17 : vector<8xf32> to vector<8x1xf32>
    %cst_7 = arith.constant 0.000000e+00 : f32
    %19 = vector.broadcast %cst_7 : f32 to vector<8x128xf32>
    %20 = arith.subf %19, %6 : vector<8x128xf32>
    %21 = vector.broadcast %18 : vector<8x1xf32> to vector<8x128xf32>
    %22 = arith.subf %6, %21 : vector<8x128xf32>
    %cst_8 = arith.constant -1.000000e+30 : f32
    %23 = vector.broadcast %cst_8 : f32 to vector<8x128xf32>
    %24 = arith.select %14, %22, %23 : vector<8x128xi1>, vector<8x128xf32>
    %25 = arith.select %9, %20, %24 : vector<8x128xi1>, vector<8x128xf32>
    %26 = math.exp %25 : vector<8x128xf32>
    %cst_9 = arith.constant 0.000000e+00 : f32
    %27 = vector.broadcast %cst_9 : f32 to vector<8x128xf32>
    %28 = arith.select %14, %26, %27 : vector<8x128xi1>, vector<8x128xf32>
    %cst_10 = arith.constant dense<0.000000e+00> : vector<8xf32>
    %29 = vector.multi_reduction <add>, %28, %cst_10 [1] : vector<8x128xf32> to vector<8xf32>
    %30 = vector.shape_cast %29 : vector<8xf32> to vector<8x1xf32>
    %cst_11 = arith.constant 1.000000e+00 : f32
    %31 = vector.broadcast %cst_11 : f32 to vector<8x128xf32>
    %32 = arith.addf %31, %26 : vector<8x128xf32>
    %33 = vector.shape_cast %30 : vector<8x1xf32> to vector<8x1xf32>
    %34 = vector.broadcast %33 : vector<8x1xf32> to vector<8x128xf32>
    %35 = arith.select %9, %32, %34 : vector<8x128xi1>, vector<8x128xf32>
    %cst_12 = arith.constant 1.000000e+00 : f32
    %36 = vector.broadcast %cst_12 : f32 to vector<8x128xf32>
    %37 = arith.select %9, %36, %26 : vector<8x128xi1>, vector<8x128xf32>
    %38 = tpu.reciprocal %35 {approx = true} : vector<8x128xf32> -> vector<8x128xf32>
    %39 = arith.mulf %37, %38 : vector<8x128xf32>
    %40 = arith.truncf %39 : vector<8x128xf32> to vector<8x128xbf16>
    %c0_13 = arith.constant 0 : index
    %c0_14 = arith.constant 0 : index
    %41 = vector.load %arg4[%c0_13, %c0_14] : memref<8x128xbf16, #tpu.memory_space<vmem>>, vector<8x128xbf16>
    tpu.vector_store %arg4[%c0_13, %c0_14], %40 {strides = array<i32>} : memref<8x128xbf16, #tpu.memory_space<vmem>>, vector<8x128xbf16>,
    return
  }
  func.func @transform_0(%arg0: i32) -> (i32, i32) {
    %c0_i32 = arith.constant 0 : i32
    %c0_i32_0 = arith.constant 0 : i32
    return %arg0, %c0_i32 : i32, i32
  }
  func.func @transform_1(%arg0: i32) -> (i32, i32) {
    %c0_i32 = arith.constant 0 : i32
    %c0_i32_0 = arith.constant 0 : i32
    %c0_i32_1 = arith.constant 0 : i32
    return %c0_i32, %c0_i32_0 : i32, i32
  }
  func.func @transform_2(%arg0: i32) -> (i32, i32) {
    %c0_i32 = arith.constant 0 : i32
    %c0_i32_0 = arith.constant 0 : i32
    %c0_i32_1 = arith.constant 0 : i32
    return %c0_i32, %c0_i32_0 : i32, i32
  }
  func.func @transform_3(%arg0: i32) -> (i32, i32) {
    %c0_i32 = arith.constant 0 : i32
    %c0_i32_0 = arith.constant 0 : i32
    return %arg0, %c0_i32 : i32, i32
  }
}

</mosaic_0001>

<bundles_post_ra>
// kernel: stepwise_classifier.1
= control target key start
LH: loop header
LB: loop body
LE: loop exit
PB: predicated region body
PF: predicated region fallthrough
CT: control target
= control target key end

     0   :  { %8 = vsyncpa [#allocation3], 0  ;;  %s649_s0 = inlined_call_operand.hbm [shape: f32[8,512], index: 0, kind: input, shape index: {}]   ;;  %s650_s1 = inlined_call_operand.hbm [shape: bf16[512,128], index: 1, kind: input, shape index: {}]   ;;  %s651_s2 = inlined_call_operand.vmem [shape: f32[1,128], index: 2, kind: input, shape index: {}]   ;;  %s652_s3 = inlined_call_operand.vmem [shape: bf16[8,128], index: 3, kind: output, shape index: {}]  }
   0x1   :  { %9 = vsyncpa [#allocation5], 0  ;;  %s588_s12 = smov [#allocation2]   ;;  %s589_s14 = smov [#allocation4]  }
   0x2   :  { %s16_s13 = sshll.u32 %s588_s12, 4  ;;  %s25_s15 = sshll.u32 %s589_s14, 4  ;;  %s17_s13 = int_to_ptr.vmem [resolvable:$true] %s16_s13  ;;  %s612_s15 = int_to_ptr.vmem [resolvable:$true] %s25_s15 }
   0x3   :  { %s540_s18 = scalar_lea.hbm %s649_s0, 512 }
   0x4   :  { %p541_p0 = scmp.ne.s32.totalorder %s649_s0, %s540_s18  ;;  %p544_p1 = scmp.lt.u32.totalorder %s540_s18, %s649_s0 }
   0x6   :  { %p546_p2 = pnand %p544_p1, %p541_p0 }
   0x8   :  { %549 = shalt.err (!%p546_p2)
}
   0x9   :  { %s550_s23 = scalar_lea.vmem %s17_s13, 512  ;;  %p555_p4 = scmp.lt.s32.totalorder %s17_s13, %s17_s13 }
   0xa   :  { %p551_p3 = scmp.ne.s32.totalorder %s17_s13, %s550_s23  ;;  %p556_p5 = scmp.lt.s32.totalorder %s550_s23, %s550_s23 }
   0xc   :  { %p557_p6 = por %p556_p5, %p555_p4 }
   0xe   :  { %p558_p7 = pnand %p557_p6, %p551_p3 }
  0x10   :  { %561 = shalt.err (!%p558_p7)
}
  0x11   :  { %19 = dma.hbm_to_vmem [thread:$0]  %s649_s0, 512, %s17_s13, [#allocation3]  }
  0x12   :  { %s562_s28 = scalar_lea.hbm %s650_s1, 4096 }
  0x13   :  { %p563_p8 = scmp.ne.s32.totalorder %s650_s1, %s562_s28  ;;  %p566_p9 = scmp.lt.u32.totalorder %s562_s28, %s650_s1 }
  0x15   :  { %p568_p10 = pnand %p566_p9, %p563_p8 }
  0x17   :  { %571 = shalt.err (!%p568_p10)
}
  0x18   :  { %s572_s6 = scalar_lea.vmem %s612_s15, 4096  ;;  %p577_p12 = scmp.lt.s32.totalorder %s612_s15, %s612_s15 }
  0x19   :  { %p573_p11 = scmp.ne.s32.totalorder %s612_s15, %s572_s6  ;;  %p578_p13 = scmp.lt.s32.totalorder %s572_s6, %s572_s6 }
  0x1b   :  { %p579_p0 = por %p578_p13, %p577_p12 }
  0x1d   :  { %p580_p1 = pnand %p579_p0, %p573_p11 }
  0x1f   :  { %583 = shalt.err (!%p580_p1)
}
  0x20   :  { %s590_s0 = smov 64   ;;  %s591_s7 = smov 4  }
  0x21   :  { %31 = dma.hbm_to_vmem [thread:$0]  %s650_s1, 4096, %s612_s15, [#allocation5], %s590_s0, %s590_s0, %s591_s7  }
  0x22   :  { %584 = dma.done.wait [#allocation3], 512  }
  0x23   :  { %585 = vsyncadd [#allocation3], 4294966784 }
  0x24   :  { %586 = dma.done.wait [#allocation5], 4096  }
  0x25   :  { %587 = vsyncadd [#allocation5], 4294963200  ;;  %v504_v0 = vld [vmem:[#allocation4 + $0x40] sm:$0xff]   ;;  %v508_v4 = vld [vmem:[#allocation4 + $0x48] sm:$0xff]   ;;  %v392_v40 = vlaneseq }
  0x26   :  { %v505_v1 = vld [vmem:[#allocation4 + $0xc0] sm:$0xff]   ;;  %456 = vmatprep.subr.bf16.mxu0 %v504_v0  ;;  %v509_v5 = vld [vmem:[#allocation4 + $0xc8] sm:$0xff]   ;;  %v512_v8 = vld [vmem:[#allocation4 + $0x50] sm:$0xff]  }
  0x27   :  { %v506_v2 = vld [vmem:[#allocation4] sm:$0xff]   ;;  %478 = vmatprep.subr.bf16.mxu1 %v505_v1  ;;  %v510_v6 = vld [vmem:[#allocation4 + $0x8] sm:$0xff]   ;;  %v513_v9 = vld [vmem:[#allocation4 + $0xd0] sm:$0xff]   ;;  %v393_v41 = vand.u32 127, %v392_v40 }
  0x28   :  { %v507_v3 = vld [vmem:[#allocation4 + $0x80] sm:$0xff]   ;;  %457 = vmatpush3.bf16.msra.mxu0 %v506_v2  ;;  %v511_v7 = vld [vmem:[#allocation4 + $0x88] sm:$0xff]   ;;  %v514_v10 = vld [vmem:[#allocation4 + $0x10] sm:$0xff]  }
  0x29   :  { %479 = vmatpush3.bf16.msra.mxu1 %v507_v3  ;;  %458 = vmatprep.subr.bf16.mxu0 %v508_v4  ;;  %v515_v11 = vld [vmem:[#allocation4 + $0x90] sm:$0xff]   ;;  %v516_v12 = vld [vmem:[#allocation4 + $0x58] sm:$0xff]   ;;  %v520_v16 = vld [vmem:[#allocation4 + $0x60] sm:$0xff]   ;;  %vm395_vm0 = vcmp.ge.s32.totalorder %v393_v41, 1  ;;  %vm396_vm1 = vcmp.lt.s32.totalorder %v393_v41, 6  ;;  %vm394_vm3 = vcmp.eq.s32.totalorder %v393_v41, 0 }
  0x2a   :  { %480 = vmatprep.subr.bf16.mxu1 %v509_v5  ;;  %v517_v13 = vld [vmem:[#allocation4 + $0xd8] sm:$0xff]   ;;  %v521_v17 = vld [vmem:[#allocation4 + $0xe0] sm:$0xff]   ;;  %v524_v20 = vld [vmem:[#allocation4 + $0x68] sm:$0xff]  }
  0x2b   :  { %v518_v14 = vld [vmem:[#allocation4 + $0x18] sm:$0xff]   ;;  %v522_v18 = vld [vmem:[#allocation4 + $0x20] sm:$0xff]   ;;  %v525_v21 = vld [vmem:[#allocation4 + $0xe8] sm:$0xff]  }
  0x2c   :  { %459 = vmatpush3.bf16.msra.mxu0 %v510_v6  ;;  %v519_v15 = vld [vmem:[#allocation4 + $0x98] sm:$0xff]   ;;  %v523_v19 = vld [vmem:[#allocation4 + $0xa0] sm:$0xff]   ;;  %v526_v22 = vld [vmem:[#allocation4 + $0x28] sm:$0xff]  }
  0x2d   :  { %481 = vmatpush3.bf16.msra.mxu1 %v511_v7  ;;  %460 = vmatprep.subr.bf16.mxu0 %v512_v8  ;;  %v527_v23 = vld [vmem:[#allocation4 + $0xa8] sm:$0xff]   ;;  %v528_v24 = vld [vmem:[#allocation4 + $0x70] sm:$0xff]   ;;  %v532_v28 = vld [vmem:[#allocation4 + $0x78] sm:$0xff]  }
  0x2e   :  { %482 = vmatprep.subr.bf16.mxu1 %v513_v9  ;;  %v529_v25 = vld [vmem:[#allocation4 + $0xf0] sm:$0xff]   ;;  %v533_v29 = vld [vmem:[#allocation4 + $0xf8] sm:$0xff]   ;;  %v42_v32 = vld [vmem:[#allocation2 + $0x8] sm:$0xff] }
  0x2f   :  { %v530_v26 = vld [vmem:[#allocation4 + $0x30] sm:$0xff]   ;;  %v534_v30 = vld [vmem:[#allocation4 + $0x38] sm:$0xff]   ;;  %v41_v34 = vld [vmem:[#allocation2] sm:$0xff]  ;;  %v46_v35 = vpack.c.bf16 %v42_v32, %v42_v32 }
  0x30   :  { %461 = vmatpush3.bf16.msra.mxu0 %v514_v10  ;;  %v531_v27 = vld [vmem:[#allocation4 + $0xb0] sm:$0xff]   ;;  %v535_v31 = vld [vmem:[#allocation4 + $0xb8] sm:$0xff]   ;;  %v45_v37 = vpack.c.bf16 %v41_v34, %v41_v34  ;;  %vm397_vm2 = vmand %vm395_vm0, %vm396_vm1 }
  0x31   :  { %483 = vmatpush3.bf16.msra.mxu1 %v515_v11  ;;  %462 = vmatprep.subr.bf16.mxu0 %v516_v12  ;;  %v44_v33 = vld [vmem:[#allocation2 + $0x18] sm:$0xff]  ;;  %v43_v38 = vld [vmem:[#allocation2 + $0x10] sm:$0xff] }
  0x32   :  { %484 = vmatprep.subr.bf16.mxu1 %v517_v13  ;;  %v48_v36 = vpack.c.bf16 %v44_v33, %v44_v33  ;;  %v47_v39 = vpack.c.bf16 %v43_v38, %v43_v38  ;;  %344 = vmatprep.mubr.bf16.mxu0 %v46_v35  ;;  %v423_v44 = vld [vmem:[%s651_s2] ss:$0 sm:$0xff] }
  0x34   :  { %463 = vmatpush3.bf16.msra.mxu0 %v518_v14  ;;  %384 = vmatprep.mubr.bf16.mxu1 %v48_v36 }
  0x35   :  { %485 = vmatpush3.bf16.msra.mxu1 %v519_v15  ;;  %464 = vmatprep.subr.bf16.mxu0 %v520_v16 }
  0x36   :  { %486 = vmatprep.subr.bf16.mxu1 %v521_v17 }
  0x38   :  { %465 = vmatpush3.bf16.msra.mxu0 %v522_v18 }
  0x39   :  { %487 = vmatpush3.bf16.msra.mxu1 %v523_v19  ;;  %466 = vmatprep.subr.bf16.mxu0 %v524_v20 }
  0x3a   :  { %488 = vmatprep.subr.bf16.mxu1 %v525_v21 }
  0x3c   :  { %467 = vmatpush3.bf16.msra.mxu0 %v526_v22 }
  0x3d   :  { %489 = vmatpush3.bf16.msra.mxu1 %v527_v23  ;;  %468 = vmatprep.subr.bf16.mxu0 %v528_v24 }
  0x3e   :  { %490 = vmatprep.subr.bf16.mxu1 %v529_v25 }
  0x40   :  { %469 = vmatpush3.bf16.msra.mxu0 %v530_v26 }
  0x41   :  { %491 = vmatpush3.bf16.msra.mxu1 %v531_v27  ;;  %470 = vmatprep.subr.bf16.mxu0 %v532_v28 }
  0x42   :  { %492 = vmatprep.subr.bf16.mxu1 %v533_v29 }
  0x44   :  { %471 = vmatpush3.bf16.msra.mxu0 %v534_v30 }
  0x45   :  { %493 = vmatpush3.bf16.msra.mxu1 %v535_v31 }
  0x47   :  { %345 = vmatmul.mubr.bf16.vlgmr.msra.gmra.mrb[0].mxu0 %v45_v37 }
  0x48   :  { %385 = vmatmul.mubr.bf16.vlgmr.msra.gmra.mrb[0].mxu1 %v47_v39 }
 0x11a   :  { %v472_v42 = vpop.f32.mrb[0].mxu0 }
 0x11b   :  { %v494_v43 = vpop.f32.mrb[0].mxu1  ;;  %v473_v45 = vpop.f32.mrb[1].mxu0 }
 0x11c   :  { %v495_v46 = vpop.f32.mrb[1].mxu1  ;;  %v474_v47 = vadd.f32 %v473_v45, %v472_v42  ;;  %v475_v49 = vpop.f32.mrb[2].mxu0 }
 0x11d   :  { %v496_v48 = vadd.f32 %v495_v46, %v494_v43  ;;  %v497_v50 = vpop.f32.mrb[2].mxu1  ;;  %v476_v51 = vpop.f32.mrb[3].mxu0 }
 0x11e   :  { %v498_v52 = vpop.f32.mrb[3].mxu1  ;;  %v347_v53 = vadd.f32 %v474_v47, %v423_v44 }
 0x120   :  { %v387_v54 = vadd.f32 %v496_v48, %v347_v53 }
 0x122   :  { %v398_v55 = vsel %vm397_vm2, %v387_v54, -1e+30  ;;  %v401_v58 = vsub.f32 0.0, %v387_v54 }
 0x123   :  { %399 = vmax.xlane.f32.xlu0 %v398_v55 }
 0x1b0   :  { %v400_v56 = vpop.xlane.xlu0 %399 }
 0x1b1   :  { %v402_v57 = vsub.f32 %v387_v54, %v400_v56 }
 0x1b3   :  { %v403_v59 = vsel %vm397_vm2, %v402_v57, -1e+30 }
 0x1b4   :  { %v404_v60 = vsel %vm394_vm3, %v401_v58, %v403_v59 }
 0x1b5   :  { %v405_v61 = vmul.f32 1.442695, %v404_v60 }
 0x1b7   :  { %536 = vpow2.f32 %v405_v61 }
 0x1c1   :  { %v537_v62 = vpop.eup %536 }
 0x1c2   :  { %v407_v63 = vsel %vm397_vm2, %v537_v62, 0.0  ;;  %v410_v0 = vadd.f32 1.0, %v537_v62  ;;  %v412_v4 = vsel %vm394_vm3, 1.0, %v537_v62 }
 0x1c3   :  { %408 = vadd.xlane.f32.xlu0 %v407_v63 }
 0x250   :  { %v409_v1 = vpop.xlane.xlu0 %408 }
 0x251   :  { %v411_v2 = vsel %vm394_vm3, %v410_v0, %v409_v1 }
 0x252   :  { %538 = vrcp.f32 %v411_v2 }
 0x25c   :  { %v539_v3 = vpop.eup %538 }
 0x25d   :  { %v414_v5 = vmul.f32 %v539_v3, %v412_v4 }
 0x25f   :  { %v415_v6 = vpack.c.bf16 %v414_v5, %v414_v5 }
 0x261   :  { %416 = vst [vmem:[%s652_s3] sm:$0xf] %v415_v6 }
 0x262   :  { %421 = vsyncpa [#allocation3], 1 }
 0x263   :  { %422 = vsyncpa [#allocation5], 1 }

</bundles_post_ra>
